<compile_context>
chip_gen: v7x
topology: tpu7x:2x2x1
jax: 0.10.0
libtpu: 0.0.40
codegen_flags: <defaults>
</compile_context>

<pallas_src>
from math import floor

import jax
import jax.numpy as jnp
from jax import lax
from jax.experimental import pallas as pl
from jax.experimental.pallas import tpu as pltpu


def _compute_out_shape(height, width, kernel_size, stride, padding):
    out_height = floor((height + 2 * padding[0] - kernel_size[0]) / stride[0] + 1)
    out_width = floor((width + 2 * padding[1] - kernel_size[1]) / stride[1] + 1)
    return out_height, out_width


def _int_to_tuple(x):
    return x if isinstance(x, tuple) else (x, x)


def _make_maxpool_kernel(H, W, Kh, Kw, sh, sw, ph, pw, OH, OW, dtype):
    """Per-lane-tile max pool, fused-NC-last layout, separable taps."""
    padded = (ph > 0) or (pw > 0)
    use_row_scratch = sh > 1          # strided height taps read from VMEM scratch
    Hp, Wp = H + 2 * ph, W + 2 * pw

    if jnp.issubdtype(jnp.dtype(dtype), jnp.floating):
        neg = float("-inf")
    else:
        neg = int(jnp.iinfo(dtype).min)

    def _w_idx(kw):
        # Width taps live on the sublane axis -> cheap (possibly strided)
        # sublane-offset reads, never lane permutes.
        return pl.ds(kw, OW) if sw == 1 else pl.ds(kw, OW, stride=sw)

    def _h_idx(kh):
        return pl.ds(kh, OH) if sh == 1 else pl.ds(kh, OH, stride=sh)

    def kernel(x_ref, o_ref, *scratch):
        # x_ref: (H,  W,  CT)   input block (fused N*C on lanes)
        # o_ref: (OH, OW, CT)   output block (lane-dense store)
        CT = x_ref.shape[-1]
        si = 0

        if padded:
            # pad_ref: (Hp, Wp, CT) padded-input scratch.  Only the border
            # bands need -inf; the interior is fully overwritten each step.
            pad_ref = scratch[si]
            si += 1
            if ph > 0:
                hband = jnp.full((ph, Wp, CT), neg, dtype)
                pad_ref[pl.ds(0, ph), :, :] = hband
                pad_ref[pl.ds(ph + H, ph), :, :] = hband
            if pw > 0:
                wband = jnp.full((Hp, pw, CT), neg, dtype)
                pad_ref[:, pl.ds(0, pw), :] = wband
                pad_ref[:, pl.ds(pw + W, pw), :] = wband
            pad_ref[pl.ds(ph, H), pl.ds(pw, W), :] = x_ref[...]
            src = pad_ref
        else:
            src = x_ref

        # Pass 1: max over Kw width taps (sublane offsets / strides).
        acc_w = src[:, _w_idx(0), :]
        for kw in range(1, Kw):
            acc_w = jnp.maximum(acc_w, src[:, _w_idx(kw), :])

        # Pass 2: max over Kh height taps.
        if use_row_scratch:
            # Strided height taps via a VMEM scratch read with strided pl.ds.
            row_ref = scratch[si]
            si += 1
            row_ref[...] = acc_w
            acc_h = row_ref[_h_idx(0), :, :]
            for kh in range(1, Kh):
                acc_h = jnp.maximum(acc_h, row_ref[_h_idx(kh), :, :])
        else:
            # Unit height stride: pure register slices, no scratch round-trip.
            acc_h = acc_w[0:OH]
            for kh in range(1, Kh):
                acc_h = jnp.maximum(acc_h, acc_w[kh:kh + OH])

        o_ref[...] = acc_h.astype(o_ref.dtype)

    return kernel


class PoolUnitPallas:
    """Pallas realization of PoolUnit (MaxPool2d with BaseUnit geometry)."""

    def __init__(self, height, width, kernel_size=5, stride=1, padding=None):
        self.in_height = height
        self.in_width = width
        self.kernel_size = kernel_size
        self.stride = stride
        self.padding = padding if padding is not None else kernel_size // 2
        self._ks = _int_to_tuple(self.kernel_size)
        self._st = _int_to_tuple(self.stride)
        self._pd = _int_to_tuple(self.padding)
        self.out_height, self.out_width = _compute_out_shape(
            height, width, self._ks, self._st, self._pd)

    def __call__(self, x):
        # x: (N, C, H, W); max is exact in any dtype (no f32 upcast needed).
        N, C, H, W = x.shape
        assert H == self.in_height and W == self.in_width
        (Kh, Kw), (sh, sw), (ph, pw) = self._ks, self._st, self._pd
        OH, OW = self.out_height, self.out_width
        Hp, Wp = H + 2 * ph, W + 2 * pw
        padded = (ph > 0) or (pw > 0)
        dtype = x.dtype
        itemsize = jnp.dtype(dtype).itemsize

        # Lane-dense layout: fuse N and C onto the 128-lane axis.
        # (Layout plumbing in the wrapper; the kernel never shifts along lanes
        #  and never issues a masked narrow-lane store.)
        NC = N * C
        x_t = jnp.transpose(x, (2, 3, 0, 1)).reshape(H, W, NC)  # (H, W, N*C)

        # Lane-tile selection: multiples of 128 when possible, grown while the
        # working set (double-buffered in/out blocks + scratch) stays inside a
        # conservative VMEM budget; otherwise one full-NC block (block equal
        # to the full array dim satisfies the (8,128) rule at any size).
        def _vmem_bytes(t):
            blocks = 2 * (H * W + OH * OW) * t                 # double-buffered
            scratch = (Hp * Wp * t if padded else 0) + (Hp * OW * t if sh > 1 else 0)
            return (blocks + scratch) * itemsize

        LANE = 128
        if NC % LANE == 0:
            tile = LANE
            budget = 12 * 1024 * 1024
            while (tile * 2 <= NC and NC % (tile * 2) == 0
                   and _vmem_bytes(tile * 2) <= budget):
                tile *= 2
        else:
            tile = NC
        num_tiles = NC // tile

        kernel = _make_maxpool_kernel(H, W, Kh, Kw, sh, sw, ph, pw, OH, OW, dtype)

        scratch_shapes = []
        if padded:
            scratch_shapes.append(pltpu.VMEM((Hp, Wp, tile), dtype))
        if sh > 1:
            scratch_shapes.append(pltpu.VMEM((Hp, OW, tile), dtype))

        out_t = pl.pallas_call(
            kernel,
            out_shape=jax.ShapeDtypeStruct((OH, OW, NC), dtype),
            grid=(num_tiles,),
            in_specs=[pl.BlockSpec((H, W, tile), lambda c: (0, 0, c))],
            out_specs=pl.BlockSpec((OH, OW, tile), lambda c: (0, 0, c)),
            scratch_shapes=scratch_shapes,
            compiler_params=pltpu.CompilerParams(
                dimension_semantics=("parallel",)),
            cost_estimate=pl.CostEstimate(
                flops=(Kh + Kw) * NC * OH * OW,
                transcendentals=0,
                bytes_accessed=(NC * H * W + NC * OH * OW) * itemsize),
        )(x_t)

        # (OH, OW, N*C) -> (N, C, OH, OW) to match the PyTorch output layout.
        return jnp.transpose(out_t.reshape(OH, OW, N, C), (2, 3, 0, 1))


if __name__ == "__main__":
    key = jax.random.PRNGKey(0)
    N, C, H, W = 2, 4, 16, 16
    x = jax.random.normal(key, (N, C, H, W), dtype=jnp.float32)

    unit = PoolUnitPallas(height=H, width=W, kernel_size=5, stride=1)
    y = jax.block_until_ready(unit(x))

    assert y.shape == (N, C, unit.out_height, unit.out_width), y.shape

    # Pure-JAX reference of nn.MaxPool2d semantics (implicit -inf padding).
    (Kh, Kw), (sh, sw), (ph, pw) = unit._ks, unit._st, unit._pd
    ref = lax.reduce_window(
        x, -jnp.inf, lax.max,
        window_dimensions=(1, 1, Kh, Kw),
        window_strides=(1, 1, sh, sw),
        padding=((0, 0), (0, 0), (ph, ph), (pw, pw)))
    assert jnp.allclose(y, ref, atol=0.0, rtol=0.0), float(jnp.max(jnp.abs(y - ref)))

    print("KERNEL_OK")
</pallas_src>

<mosaic_0001>
module attributes {stable_mosaic.version = 11 : i64} {
  func.func @kernel(%arg0: i32, %arg1: memref<16x16x8xf32, #tpu.memory_space<vmem>>, %arg2: memref<16x16x8xf32, #tpu.memory_space<vmem>>, %arg3: memref<20x20x8xf32, #tpu.memory_space<vmem>>) attributes {dimension_semantics = [#tpu.dimension_semantics<parallel>], iteration_bounds = array<i64: 1>, scalar_prefetch = 0 : i64, scratch_operands = 1 : i64, tpu.core_type = #tpu.core_type<tc>, window_params = [{transform_indices = @transform_0, window_bounds = array<i64: 16, 16, 8>}, {transform_indices = @transform_1, window_bounds = array<i64: 16, 16, 8>}]} {
    %cst = arith.constant 0xFF800000 : f32
    %0 = vector.broadcast %cst : f32 to vector<2x20x8xf32>
    %c0 = arith.constant 0 : index
    %c0_0 = arith.constant 0 : index
    %c0_1 = arith.constant 0 : index
    %1 = vector.load %arg3[%c0, %c0_0, %c0_1] : memref<20x20x8xf32, #tpu.memory_space<vmem>>, vector<2x20x8xf32>
    tpu.vector_store %arg3[%c0, %c0_0, %c0_1], %0 {strides = array<i32>} : memref<20x20x8xf32, #tpu.memory_space<vmem>>, vector<2x20x8xf32>,
    %c18 = arith.constant 18 : index
    %c0_2 = arith.constant 0 : index
    %c0_3 = arith.constant 0 : index
    %2 = vector.load %arg3[%c18, %c0_2, %c0_3] : memref<20x20x8xf32, #tpu.memory_space<vmem>>, vector<2x20x8xf32>
    tpu.vector_store %arg3[%c18, %c0_2, %c0_3], %0 {strides = array<i32>} : memref<20x20x8xf32, #tpu.memory_space<vmem>>, vector<2x20x8xf32>,
    %cst_4 = arith.constant 0xFF800000 : f32
    %3 = vector.broadcast %cst_4 : f32 to vector<20x2x8xf32>
    %c0_5 = arith.constant 0 : index
    %c0_6 = arith.constant 0 : index
    %c0_7 = arith.constant 0 : index
    %4 = vector.load %arg3[%c0_5, %c0_6, %c0_7] : memref<20x20x8xf32, #tpu.memory_space<vmem>>, vector<20x2x8xf32>
    tpu.vector_store %arg3[%c0_5, %c0_6, %c0_7], %3 {strides = array<i32>} : memref<20x20x8xf32, #tpu.memory_space<vmem>>, vector<20x2x8xf32>,
    %c0_8 = arith.constant 0 : index
    %c18_9 = arith.constant 18 : index
    %c0_10 = arith.constant 0 : index
    %5 = vector.load %arg3[%c0_8, %c18_9, %c0_10] : memref<20x20x8xf32, #tpu.memory_space<vmem>>, vector<20x2x8xf32>
    tpu.vector_store %arg3[%c0_8, %c18_9, %c0_10], %3 {strides = array<i32>} : memref<20x20x8xf32, #tpu.memory_space<vmem>>, vector<20x2x8xf32>,
    %c0_11 = arith.constant 0 : index
    %c0_12 = arith.constant 0 : index
    %c0_13 = arith.constant 0 : index
    %6 = vector.load %arg1[%c0_11, %c0_12, %c0_13] : memref<16x16x8xf32, #tpu.memory_space<vmem>>, vector<16x16x8xf32>
    %c2 = arith.constant 2 : index
    %c2_14 = arith.constant 2 : index
    %c0_15 = arith.constant 0 : index
    %7 = vector.load %arg3[%c2, %c2_14, %c0_15] : memref<20x20x8xf32, #tpu.memory_space<vmem>>, vector<16x16x8xf32>
    tpu.vector_store %arg3[%c2, %c2_14, %c0_15], %6 {strides = array<i32>} : memref<20x20x8xf32, #tpu.memory_space<vmem>>, vector<16x16x8xf32>,
    %c0_16 = arith.constant 0 : index
    %c0_17 = arith.constant 0 : index
    %c0_18 = arith.constant 0 : index
    %8 = vector.load %arg3[%c0_16, %c0_17, %c0_18] : memref<20x20x8xf32, #tpu.memory_space<vmem>>, vector<20x16x8xf32>
    %c0_19 = arith.constant 0 : index
    %c1 = arith.constant 1 : index
    %c0_20 = arith.constant 0 : index
    %9 = vector.load %arg3[%c0_19, %c1, %c0_20] : memref<20x20x8xf32, #tpu.memory_space<vmem>>, vector<20x16x8xf32>
    %10 = arith.maximumf %8, %9 : vector<20x16x8xf32>
    %c0_21 = arith.constant 0 : index
    %c2_22 = arith.constant 2 : index
    %c0_23 = arith.constant 0 : index
    %11 = vector.load %arg3[%c0_21, %c2_22, %c0_23] : memref<20x20x8xf32, #tpu.memory_space<vmem>>, vector<20x16x8xf32>
    %12 = arith.maximumf %10, %11 : vector<20x16x8xf32>
    %c0_24 = arith.constant 0 : index
    %c3 = arith.constant 3 : index
    %c0_25 = arith.constant 0 : index
    %13 = vector.load %arg3[%c0_24, %c3, %c0_25] : memref<20x20x8xf32, #tpu.memory_space<vmem>>, vector<20x16x8xf32>
    %14 = arith.maximumf %12, %13 : vector<20x16x8xf32>
    %c0_26 = arith.constant 0 : index
    %c4 = arith.constant 4 : index
    %c0_27 = arith.constant 0 : index
    %15 = vector.load %arg3[%c0_26, %c4, %c0_27] : memref<20x20x8xf32, #tpu.memory_space<vmem>>, vector<20x16x8xf32>
    %16 = arith.maximumf %14, %15 : vector<20x16x8xf32>
    %17 = vector.extract_strided_slice %16 {offsets = [0, 0, 0], sizes = [16, 16, 8], strides = [1, 1, 1]} : vector<20x16x8xf32> to vector<16x16x8xf32>
    %18 = vector.extract_strided_slice %16 {offsets = [1, 0, 0], sizes = [16, 16, 8], strides = [1, 1, 1]} : vector<20x16x8xf32> to vector<16x16x8xf32>
    %19 = arith.maximumf %17, %18 : vector<16x16x8xf32>
    %20 = vector.extract_strided_slice %16 {offsets = [2, 0, 0], sizes = [16, 16, 8], strides = [1, 1, 1]} : vector<20x16x8xf32> to vector<16x16x8xf32>
    %21 = arith.maximumf %19, %20 : vector<16x16x8xf32>
    %22 = vector.extract_strided_slice %16 {offsets = [3, 0, 0], sizes = [16, 16, 8], strides = [1, 1, 1]} : vector<20x16x8xf32> to vector<16x16x8xf32>
    %23 = arith.maximumf %21, %22 : vector<16x16x8xf32>
    %24 = vector.extract_strided_slice %16 {offsets = [4, 0, 0], sizes = [16, 16, 8], strides = [1, 1, 1]} : vector<20x16x8xf32> to vector<16x16x8xf32>
    %25 = arith.maximumf %23, %24 : vector<16x16x8xf32>
    %c0_28 = arith.constant 0 : index
    %c0_29 = arith.constant 0 : index
    %c0_30 = arith.constant 0 : index
    %26 = vector.load %arg2[%c0_28, %c0_29, %c0_30] : memref<16x16x8xf32, #tpu.memory_space<vmem>>, vector<16x16x8xf32>
    tpu.vector_store %arg2[%c0_28, %c0_29, %c0_30], %25 {strides = array<i32>} : memref<16x16x8xf32, #tpu.memory_space<vmem>>, vector<16x16x8xf32>,
    return
  }
  func.func @transform_0(%arg0: i32) -> (i32, i32, i32) {
    %c0_i32 = arith.constant 0 : i32
    %c0_i32_0 = arith.constant 0 : i32
    %c0_i32_1 = arith.constant 0 : i32
    return %c0_i32, %c0_i32_0, %arg0 : i32, i32, i32
  }
  func.func @transform_1(%arg0: i32) -> (i32, i32, i32) {
    %c0_i32 = arith.constant 0 : i32
    %c0_i32_0 = arith.constant 0 : i32
    %c0_i32_1 = arith.constant 0 : i32
    return %c0_i32, %c0_i32_0, %arg0 : i32, i32, i32
  }
}

</mosaic_0001>

<bundles_post_ra>
// kernel: tpu_custom_call.1
= control target key start
LH: loop header
LB: loop body
LE: loop exit
PB: predicated region body
PF: predicated region fallthrough
CT: control target
= control target key end

     0   :  { %vm8_vm0 = vcmask 64512   ;;  %vm11_vm1 = vcmask 60416   ;;  %vm23_vm2 = vcmask 58368   ;;  %v654_v0 = vmov -inf   ;;  %s1160_s0 = inlined_call_operand.vmem [shape: f32[16,16,8], index: 0, kind: input, shape index: {}]   ;;  %s1161_s1 = inlined_call_operand.vmem [shape: f32[16,16,8], index: 1, kind: output, shape index: {}]  }
   0x1   :  { %9 = vst.msk [vmem:[#allocation2] sm:$0xff] %vm8_vm0, %v654_v0  ;;  %10 = vst.msk [vmem:[#allocation2 + $0x8] sm:$0xff] %vm8_vm0, %v654_v0  ;;  %v64_v1 = vld [vmem:[%s1160_s0] sm:$0xff]  ;;  %v65_v2 = vld [vmem:[%s1160_s0 + $0x8] sm:$0xff] }
   0x2   :  { %13 = vst.msk [vmem:[#allocation2 + $0x18] sm:$0xff] %vm8_vm0, %v654_v0  ;;  %14 = vst.msk [vmem:[#allocation2 + $0x20] sm:$0xff] %vm8_vm0, %v654_v0  ;;  %v66_v3 = vld [vmem:[%s1160_s0 + $0x10] sm:$0xff]  ;;  %v67_v4 = vld [vmem:[%s1160_s0 + $0x18] sm:$0xff] }
   0x3   :  { %17 = vst.msk [vmem:[#allocation2 + $0x1b0] sm:$0xff] %vm8_vm0, %v654_v0  ;;  %18 = vst.msk [vmem:[#allocation2 + $0x1b8] sm:$0xff] %vm8_vm0, %v654_v0  ;;  %v68_v5 = vld [vmem:[%s1160_s0 + $0x20] sm:$0xff]  ;;  %v69_v6 = vld [vmem:[%s1160_s0 + $0x28] sm:$0xff] }
   0x4   :  { %20 = vst.msk [vmem:[#allocation2 + $0x1c8] sm:$0xff] %vm8_vm0, %v654_v0  ;;  %21 = vst.msk [vmem:[#allocation2 + $0x1d0] sm:$0xff] %vm8_vm0, %v654_v0  ;;  %v70_v7 = vld [vmem:[%s1160_s0 + $0x30] sm:$0xff]  ;;  %v71_v8 = vld [vmem:[%s1160_s0 + $0x38] sm:$0xff] }
   0x5   :  { %12 = vst.msk [vmem:[#allocation2 + $0x10] sm:$0xf] %vm11_vm1, %v654_v0  ;;  %15 = vst.msk [vmem:[#allocation2 + $0x28] sm:$0xf] %vm11_vm1, %v654_v0  ;;  %v72_v9 = vld [vmem:[%s1160_s0 + $0x40] sm:$0xff]  ;;  %v73_v10 = vld [vmem:[%s1160_s0 + $0x48] sm:$0xff] }
   0x6   :  { %19 = vst.msk [vmem:[#allocation2 + $0x1c0] sm:$0xf] %vm11_vm1, %v654_v0  ;;  %22 = vst.msk [vmem:[#allocation2 + $0x1d8] sm:$0xf] %vm11_vm1, %v654_v0  ;;  %v74_v11 = vld [vmem:[%s1160_s0 + $0x50] sm:$0xff]  ;;  %v75_v12 = vld [vmem:[%s1160_s0 + $0x58] sm:$0xff] }
   0x7   :  { %26 = vst.msk [vmem:[#allocation2 + $0x30] sm:$0x3] %vm23_vm2, %v654_v0  ;;  %27 = vst.msk [vmem:[#allocation2 + $0x48] sm:$0x3] %vm23_vm2, %v654_v0  ;;  %v76_v13 = vld [vmem:[%s1160_s0 + $0x60] sm:$0xff]  ;;  %v77_v14 = vld [vmem:[%s1160_s0 + $0x68] sm:$0xff] }
   0x8   :  { %28 = vst.msk [vmem:[#allocation2 + $0x60] sm:$0x3] %vm23_vm2, %v654_v0  ;;  %29 = vst.msk [vmem:[#allocation2 + $0x78] sm:$0x3] %vm23_vm2, %v654_v0  ;;  %v78_v15 = vld [vmem:[%s1160_s0 + $0x70] sm:$0xff]  ;;  %v79_v16 = vld [vmem:[%s1160_s0 + $0x78] sm:$0xff] }
   0x9   :  { %30 = vst.msk [vmem:[#allocation2 + $0x90] sm:$0x3] %vm23_vm2, %v654_v0  ;;  %31 = vst.msk [vmem:[#allocation2 + $0xa8] sm:$0x3] %vm23_vm2, %v654_v0  ;;  %v80_v17 = vld [vmem:[%s1160_s0 + $0x80] sm:$0xff]  ;;  %v81_v18 = vld [vmem:[%s1160_s0 + $0x88] sm:$0xff] }
   0xa   :  { %32 = vst.msk [vmem:[#allocation2 + $0xc0] sm:$0x3] %vm23_vm2, %v654_v0  ;;  %33 = vst.msk [vmem:[#allocation2 + $0xd8] sm:$0x3] %vm23_vm2, %v654_v0  ;;  %v82_v19 = vld [vmem:[%s1160_s0 + $0x90] sm:$0xff]  ;;  %v83_v20 = vld [vmem:[%s1160_s0 + $0x98] sm:$0xff] }
   0xb   :  { %34 = vst.msk [vmem:[#allocation2 + $0xf0] sm:$0x3] %vm23_vm2, %v654_v0  ;;  %35 = vst.msk [vmem:[#allocation2 + $0x108] sm:$0x3] %vm23_vm2, %v654_v0  ;;  %v84_v21 = vld [vmem:[%s1160_s0 + $0xa0] sm:$0xff]  ;;  %v85_v22 = vld [vmem:[%s1160_s0 + $0xa8] sm:$0xff] }
   0xc   :  { %36 = vst.msk [vmem:[#allocation2 + $0x120] sm:$0x3] %vm23_vm2, %v654_v0  ;;  %37 = vst.msk [vmem:[#allocation2 + $0x138] sm:$0x3] %vm23_vm2, %v654_v0  ;;  %v86_v23 = vld [vmem:[%s1160_s0 + $0xb0] sm:$0xff]  ;;  %v87_v24 = vld [vmem:[%s1160_s0 + $0xb8] sm:$0xff] }
   0xd   :  { %38 = vst.msk [vmem:[#allocation2 + $0x150] sm:$0x3] %vm23_vm2, %v654_v0  ;;  %39 = vst.msk [vmem:[#allocation2 + $0x168] sm:$0x3] %vm23_vm2, %v654_v0  ;;  %v88_v25 = vld [vmem:[%s1160_s0 + $0xc0] sm:$0xff]  ;;  %v89_v26 = vld [vmem:[%s1160_s0 + $0xc8] sm:$0xff] }
   0xe   :  { %40 = vst.msk [vmem:[#allocation2 + $0x180] sm:$0x3] %vm23_vm2, %v654_v0  ;;  %41 = vst.msk [vmem:[#allocation2 + $0x198] sm:$0x3] %vm23_vm2, %v654_v0  ;;  %v90_v27 = vld [vmem:[%s1160_s0 + $0xd0] sm:$0xff]  ;;  %v91_v28 = vld [vmem:[%s1160_s0 + $0xd8] sm:$0xff] }
   0xf   :  { %46 = vst.msk [vmem:[#allocation2 + $0x42] sm:$0x3] %vm23_vm2, %v654_v0  ;;  %47 = vst.msk [vmem:[#allocation2 + $0x5a] sm:$0x3] %vm23_vm2, %v654_v0  ;;  %v92_v29 = vld [vmem:[%s1160_s0 + $0xe0] sm:$0xff]  ;;  %v93_v30 = vld [vmem:[%s1160_s0 + $0xe8] sm:$0xff] }
  0x10   :  { %48 = vst.msk [vmem:[#allocation2 + $0x72] sm:$0x3] %vm23_vm2, %v654_v0  ;;  %49 = vst.msk [vmem:[#allocation2 + $0x8a] sm:$0x3] %vm23_vm2, %v654_v0  ;;  %v94_v31 = vld [vmem:[%s1160_s0 + $0xf0] sm:$0xff]  ;;  %v95_v32 = vld [vmem:[%s1160_s0 + $0xf8] sm:$0xff] }
  0x11   :  { %50 = vst.msk [vmem:[#allocation2 + $0xa2] sm:$0x3] %vm23_vm2, %v654_v0  ;;  %51 = vst.msk [vmem:[#allocation2 + $0xba] sm:$0x3] %vm23_vm2, %v654_v0  ;;  %v130_v33 = vld [vmem:[#allocation2 + $0x8] sm:$0xff]  ;;  %v132_v34 = vld [vmem:[#allocation2 + $0x20] sm:$0xff] }
  0x12   :  { %52 = vst.msk [vmem:[#allocation2 + $0xd2] sm:$0x3] %vm23_vm2, %v654_v0  ;;  %53 = vst.msk [vmem:[#allocation2 + $0xea] sm:$0x3] %vm23_vm2, %v654_v0  ;;  %v170_v38 = vld [vmem:[#allocation2 + $0x9] sm:$0xff]  ;;  %v172_v39 = vld [vmem:[#allocation2 + $0x21] sm:$0xff] }
  0x13   :  { %54 = vst.msk [vmem:[#allocation2 + $0x102] sm:$0x3] %vm23_vm2, %v654_v0  ;;  %55 = vst.msk [vmem:[#allocation2 + $0x11a] sm:$0x3] %vm23_vm2, %v654_v0  ;;  %v210_v43 = vmax.f32 %v130_v33, %v170_v38  ;;  %v212_v44 = vmax.f32 %v132_v34, %v172_v39  ;;  %v250_v48 = vld [vmem:[#allocation2 + $0xa] sm:$0xff]  ;;  %v252_v49 = vld [vmem:[#allocation2 + $0x22] sm:$0xff] }
  0x14   :  { %56 = vst.msk [vmem:[#allocation2 + $0x132] sm:$0x3] %vm23_vm2, %v654_v0  ;;  %57 = vst.msk [vmem:[#allocation2 + $0x14a] sm:$0x3] %vm23_vm2, %v654_v0 }
  0x15   :  { %58 = vst.msk [vmem:[#allocation2 + $0x162] sm:$0x3] %vm23_vm2, %v654_v0  ;;  %59 = vst.msk [vmem:[#allocation2 + $0x17a] sm:$0x3] %vm23_vm2, %v654_v0  ;;  %v290_v52 = vmax.f32 %v210_v43, %v250_v48  ;;  %v292_v53 = vmax.f32 %v212_v44, %v252_v49 }
  0x16   :  { %60 = vst.msk [vmem:[#allocation2 + $0x192] sm:$0x3] %vm23_vm2, %v654_v0  ;;  %61 = vst.msk [vmem:[#allocation2 + $0x1aa] sm:$0x3] %vm23_vm2, %v654_v0 }
  0x17   :  { %24 = vst.msk [vmem:[#allocation2] sm:$0x3] %vm23_vm2, %v654_v0  ;;  %25 = vst.msk [vmem:[#allocation2 + $0x18] sm:$0x3] %vm23_vm2, %v654_v0 }
  0x18   :  { %42 = vst.msk [vmem:[#allocation2 + $0x1b0] sm:$0x3] %vm23_vm2, %v654_v0  ;;  %43 = vst.msk [vmem:[#allocation2 + $0x1c8] sm:$0x3] %vm23_vm2, %v654_v0 }
  0x19   :  { %44 = vst.msk [vmem:[#allocation2 + $0x12] sm:$0x3] %vm23_vm2, %v654_v0  ;;  %45 = vst.msk [vmem:[#allocation2 + $0x2a] sm:$0x3] %vm23_vm2, %v654_v0 }
  0x1a   :  { %62 = vst.msk [vmem:[#allocation2 + $0x1c2] sm:$0x3] %vm23_vm2, %v654_v0  ;;  %63 = vst.msk [vmem:[#allocation2 + $0x1da] sm:$0x3] %vm23_vm2, %v654_v0 }
  0x1b   :  { %97 = vst.msk [vmem:[#allocation2 + $0x32] sm:$0xff] %vm8_vm0, %v64_v1  ;;  %98 = vst.msk [vmem:[#allocation2 + $0x3a] sm:$0xff] %vm8_vm0, %v65_v2 }
  0x1c   :  { %99 = vst.msk [vmem:[#allocation2 + $0x4a] sm:$0xff] %vm8_vm0, %v66_v3  ;;  %100 = vst.msk [vmem:[#allocation2 + $0x52] sm:$0xff] %vm8_vm0, %v67_v4 }
  0x1d   :  { %101 = vst.msk [vmem:[#allocation2 + $0x62] sm:$0xff] %vm8_vm0, %v68_v5  ;;  %102 = vst.msk [vmem:[#allocation2 + $0x6a] sm:$0xff] %vm8_vm0, %v69_v6 }
  0x1e   :  { %103 = vst.msk [vmem:[#allocation2 + $0x7a] sm:$0xff] %vm8_vm0, %v70_v7  ;;  %104 = vst.msk [vmem:[#allocation2 + $0x82] sm:$0xff] %vm8_vm0, %v71_v8 }
  0x1f   :  { %105 = vst.msk [vmem:[#allocation2 + $0x92] sm:$0xff] %vm8_vm0, %v72_v9  ;;  %106 = vst.msk [vmem:[#allocation2 + $0x9a] sm:$0xff] %vm8_vm0, %v73_v10  ;;  %v129_v9 = vld [vmem:[#allocation2] sm:$0xff]  ;;  %v131_v10 = vld [vmem:[#allocation2 + $0x18] sm:$0xff] }
  0x20   :  { %107 = vst.msk [vmem:[#allocation2 + $0xaa] sm:$0xff] %vm8_vm0, %v74_v11  ;;  %108 = vst.msk [vmem:[#allocation2 + $0xb2] sm:$0xff] %vm8_vm0, %v75_v12  ;;  %v330_v57 = vld [vmem:[#allocation2 + $0xb] sm:$0xff]  ;;  %v332_v58 = vld [vmem:[#allocation2 + $0x23] sm:$0xff] }
  0x21   :  { %109 = vst.msk [vmem:[#allocation2 + $0xc2] sm:$0xff] %vm8_vm0, %v76_v13  ;;  %110 = vst.msk [vmem:[#allocation2 + $0xca] sm:$0xff] %vm8_vm0, %v77_v14  ;;  %v370_v62 = vmax.f32 %v290_v52, %v330_v57  ;;  %v372_v63 = vmax.f32 %v292_v53, %v332_v58  ;;  %v410_v3 = vld [vmem:[#allocation2 + $0xc] sm:$0xff]  ;;  %v412_v4 = vld [vmem:[#allocation2 + $0x24] sm:$0xff] }
  0x22   :  { %111 = vst.msk [vmem:[#allocation2 + $0xda] sm:$0xff] %vm8_vm0, %v78_v15  ;;  %112 = vst.msk [vmem:[#allocation2 + $0xe2] sm:$0xff] %vm8_vm0, %v79_v16  ;;  %v134_v35 = vld [vmem:[#allocation2 + $0x38] sm:$0xff]  ;;  %v133_v11 = vld [vmem:[#allocation2 + $0x30] sm:$0xff] }
  0x23   :  { %113 = vst.msk [vmem:[#allocation2 + $0xf2] sm:$0xff] %vm8_vm0, %v80_v17  ;;  %114 = vst.msk [vmem:[#allocation2 + $0xfa] sm:$0xff] %vm8_vm0, %v81_v18  ;;  %v136_v36 = vld [vmem:[#allocation2 + $0x50] sm:$0xff]  ;;  %v174_v40 = vld [vmem:[#allocation2 + $0x39] sm:$0xff]  ;;  %v450_v7 = vmax.f32 %v370_v62, %v410_v3  ;;  %v452_v8 = vmax.f32 %v372_v63, %v412_v4 }
  0x24   :  { %115 = vst.msk [vmem:[#allocation2 + $0x10a] sm:$0xff] %vm8_vm0, %v82_v19  ;;  %116 = vst.msk [vmem:[#allocation2 + $0x112] sm:$0xff] %vm8_vm0, %v83_v20  ;;  %v138_v37 = vld [vmem:[#allocation2 + $0x68] sm:$0xff]  ;;  %v176_v41 = vld [vmem:[#allocation2 + $0x51] sm:$0xff]  ;;  %v214_v45 = vmax.f32 %v134_v35, %v174_v40 }
  0x25   :  { %117 = vst.msk [vmem:[#allocation2 + $0x122] sm:$0xff] %vm8_vm0, %v84_v21  ;;  %118 = vst.msk [vmem:[#allocation2 + $0x12a] sm:$0xff] %vm8_vm0, %v85_v22  ;;  %v178_v42 = vld [vmem:[#allocation2 + $0x69] sm:$0xff]  ;;  %v216_v46 = vmax.f32 %v136_v36, %v176_v41  ;;  %v254_v50 = vld [vmem:[#allocation2 + $0x3a] sm:$0xff]  ;;  %v490_v17 = vmax.f32 %v450_v7, %v452_v8 }
  0x26   :  { %119 = vst.msk [vmem:[#allocation2 + $0x13a] sm:$0xff] %vm8_vm0, %v86_v23  ;;  %120 = vst.msk [vmem:[#allocation2 + $0x142] sm:$0xff] %vm8_vm0, %v87_v24  ;;  %v218_v47 = vmax.f32 %v138_v37, %v178_v42  ;;  %v256_v51 = vld [vmem:[#allocation2 + $0x52] sm:$0xff]  ;;  %v258_v54 = vld [vmem:[#allocation2 + $0x6a] sm:$0xff]  ;;  %v294_v55 = vmax.f32 %v214_v45, %v254_v50 }
  0x27   :  { %121 = vst.msk [vmem:[#allocation2 + $0x152] sm:$0xff] %vm8_vm0, %v88_v25  ;;  %122 = vst.msk [vmem:[#allocation2 + $0x15a] sm:$0xff] %vm8_vm0, %v89_v26  ;;  %v296_v56 = vmax.f32 %v216_v46, %v256_v51  ;;  %v334_v60 = vld [vmem:[#allocation2 + $0x3b] sm:$0xff]  ;;  %v336_v61 = vld [vmem:[#allocation2 + $0x53] sm:$0xff] }
  0x28   :  { %123 = vst.msk [vmem:[#allocation2 + $0x16a] sm:$0xff] %vm8_vm0, %v90_v27  ;;  %124 = vst.msk [vmem:[#allocation2 + $0x172] sm:$0xff] %vm8_vm0, %v91_v28  ;;  %v298_v59 = vmax.f32 %v218_v47, %v258_v54  ;;  %v338_v0 = vld [vmem:[#allocation2 + $0x6b] sm:$0xff]  ;;  %v374_v1 = vmax.f32 %v294_v55, %v334_v60  ;;  %v414_v5 = vld [vmem:[#allocation2 + $0x3c] sm:$0xff] }
  0x29   :  { %125 = vst.msk [vmem:[#allocation2 + $0x182] sm:$0xff] %vm8_vm0, %v92_v29  ;;  %126 = vst.msk [vmem:[#allocation2 + $0x18a] sm:$0xff] %vm8_vm0, %v93_v30  ;;  %v376_v2 = vmax.f32 %v296_v56, %v336_v61  ;;  %v416_v6 = vld [vmem:[#allocation2 + $0x54] sm:$0xff]  ;;  %v135_v13 = vld [vmem:[#allocation2 + $0x48] sm:$0xff] }
  0x2a   :  { %127 = vst.msk [vmem:[#allocation2 + $0x19a] sm:$0xff] %vm8_vm0, %v94_v31  ;;  %128 = vst.msk [vmem:[#allocation2 + $0x1a2] sm:$0xff] %vm8_vm0, %v95_v32  ;;  %v841_v12 = vmax.f32 %v374_v1, %v414_v5  ;;  %v137_v14 = vld [vmem:[#allocation2 + $0x60] sm:$0xff]  ;;  %v378_v16 = vmax.f32 %v298_v59, %v338_v0  ;;  %v173_v19 = vld [vmem:[#allocation2 + $0x31] sm:$0xff] }
  0x2b   :  { %v169_v15 = vld [vmem:[#allocation2 + $0x1] sm:$0xff]  ;;  %v171_v18 = vld [vmem:[#allocation2 + $0x19] sm:$0xff]  ;;  %v175_v20 = vld [vmem:[#allocation2 + $0x49] sm:$0xff]  ;;  %v843_v23 = vmax.f32 %v376_v2, %v416_v6  ;;  %v213_v26 = vmax.f32 %v133_v11, %v173_v19 }
  0x2c   :  { %v209_v21 = vmax.f32 %v129_v9, %v169_v15  ;;  %v418_v22 = vld [vmem:[#allocation2 + $0x6c] sm:$0xff]  ;;  %v177_v24 = vld [vmem:[#allocation2 + $0x61] sm:$0xff]  ;;  %v211_v25 = vmax.f32 %v131_v10, %v171_v18  ;;  %v215_v27 = vmax.f32 %v135_v13, %v175_v20  ;;  %v522_v29 = vmax.f32 %v490_v17, %v841_v12  ;;  %v413_v54 = vld [vmem:[#allocation2 + $0x34] sm:$0xff] }
  0x2d   :  { %v249_v28 = vld [vmem:[#allocation2 + $0x2] sm:$0xff]  ;;  %v217_v30 = vmax.f32 %v137_v14, %v177_v24  ;;  %v251_v31 = vld [vmem:[#allocation2 + $0x1a] sm:$0xff]  ;;  %v253_v32 = vld [vmem:[#allocation2 + $0x32] sm:$0xff]  ;;  %v492_v35 = vmax.f32 %v452_v8, %v841_v12  ;;  %v847_v42 = vmax.f32 %v378_v16, %v418_v22  ;;  %v494_v55 = vmax.f32 %v841_v12, %v843_v23 }
  0x2e   :  { %v255_v33 = vld [vmem:[#allocation2 + $0x4a] sm:$0xff]  ;;  %v289_v34 = vmax.f32 %v209_v21, %v249_v28  ;;  %v257_v36 = vld [vmem:[#allocation2 + $0x62] sm:$0xff]  ;;  %v291_v37 = vmax.f32 %v211_v25, %v251_v31  ;;  %v293_v38 = vmax.f32 %v213_v26, %v253_v32  ;;  %v554_v43 = vmax.f32 %v522_v29, %v843_v23  ;;  %v333_v45 = vld [vmem:[#allocation2 + $0x33] sm:$0xff] }
  0x2f   :  { %v295_v39 = vmax.f32 %v215_v27, %v255_v33  ;;  %v329_v40 = vld [vmem:[#allocation2 + $0x3] sm:$0xff]  ;;  %v331_v41 = vld [vmem:[#allocation2 + $0x1b] sm:$0xff]  ;;  %v297_v44 = vmax.f32 %v217_v30, %v257_v36  ;;  %v335_v46 = vld [vmem:[#allocation2 + $0x4b] sm:$0xff]  ;;  %v854_v62 = vmax.f32 %v492_v35, %v843_v23  ;;  %v865_v18 = vmax.f32 %v494_v55, %v847_v42 }
  0x30   :  { %v337_v47 = vld [vmem:[#allocation2 + $0x63] sm:$0xff]  ;;  %v369_v48 = vmax.f32 %v289_v34, %v329_v40  ;;  %v371_v49 = vmax.f32 %v291_v37, %v331_v41  ;;  %v373_v50 = vmax.f32 %v293_v38, %v333_v45  ;;  %v586_v56 = vmax.f32 %v554_v43, %v847_v42  ;;  %v415_v58 = vld [vmem:[#allocation2 + $0x4c] sm:$0xff]  ;;  %v139_v60 = vld [vmem:[#allocation2 + $0x78] sm:$0xff] }
  0x31   :  { %v375_v51 = vmax.f32 %v295_v39, %v335_v46  ;;  %v409_v52 = vld [vmem:[#allocation2 + $0x4] sm:$0xff]  ;;  %v411_v53 = vld [vmem:[#allocation2 + $0x1c] sm:$0xff]  ;;  %v377_v57 = vmax.f32 %v297_v44, %v337_v47  ;;  %v141_v12 = vld [vmem:[#allocation2 + $0x90] sm:$0xff]  ;;  %v556_v15 = vmax.f32 %v854_v62, %v847_v42  ;;  %v496_v19 = vmax.f32 %v843_v23, %v847_v42 }
  0x32   :  { %v449_v59 = vmax.f32 %v369_v48, %v409_v52  ;;  %v179_v61 = vld [vmem:[#allocation2 + $0x79] sm:$0xff]  ;;  %v417_v63 = vld [vmem:[#allocation2 + $0x64] sm:$0xff]  ;;  %v451_v0 = vmax.f32 %v371_v49, %v411_v53  ;;  %v453_v1 = vmax.f32 %v373_v50, %v413_v54  ;;  %618 = vst.msk [vmem:[%s1161_s1 + $0x8] sm:$0xff] %vm8_vm0, %v586_v56  ;;  %v181_v16 = vld [vmem:[#allocation2 + $0x91] sm:$0xff] }
  0x33   :  { %v455_v2 = vmax.f32 %v375_v51, %v415_v58  ;;  %v219_v3 = vmax.f32 %v139_v60, %v179_v61  ;;  %v860_v4 = vmax.f32 %v377_v57, %v417_v63  ;;  %v259_v5 = vld [vmem:[#allocation2 + $0x7a] sm:$0xff]  ;;  %v260_v14 = vld [vmem:[#allocation2 + $0x82] sm:$0xff]  ;;  %v221_v29 = vmax.f32 %v141_v12, %v181_v16  ;;  %v261_v30 = vld [vmem:[#allocation2 + $0x92] sm:$0xff] }
  0x34   :  { %v140_v6 = vld [vmem:[#allocation2 + $0x80] sm:$0xff]  ;;  %v489_v8 = vmax.f32 %v449_v59, %v451_v0  ;;  %v491_v10 = vmax.f32 %v451_v0, %v453_v1  ;;  %v142_v25 = vld [vmem:[#allocation2 + $0x98] sm:$0xff]  ;;  %v143_v38 = vld [vmem:[#allocation2 + $0xa8] sm:$0xff] }
  0x35   :  { %v180_v7 = vld [vmem:[#allocation2 + $0x81] sm:$0xff]  ;;  %v299_v9 = vmax.f32 %v219_v3, %v259_v5  ;;  %v493_v17 = vmax.f32 %v453_v1, %v455_v2  ;;  %v182_v26 = vld [vmem:[#allocation2 + $0x99] sm:$0xff]  ;;  %v495_v33 = vmax.f32 %v455_v2, %v860_v4  ;;  %v183_v39 = vld [vmem:[#allocation2 + $0xa9] sm:$0xff]  ;;  %v301_v41 = vmax.f32 %v221_v29, %v261_v30 }
  0x36   :  { %v220_v11 = vmax.f32 %v140_v6, %v180_v7  ;;  %v339_v13 = vld [vmem:[#allocation2 + $0x7b] sm:$0xff]  ;;  %v521_v20 = vmax.f32 %v489_v8, %v453_v1  ;;  %v523_v22 = vmax.f32 %v491_v10, %v455_v2  ;;  %v340_v28 = vld [vmem:[#allocation2 + $0x83] sm:$0xff]  ;;  %v222_v32 = vmax.f32 %v142_v25, %v182_v26  ;;  %v341_v43 = vld [vmem:[#allocation2 + $0x93] sm:$0xff] }
  0x37   :  { %v379_v21 = vmax.f32 %v299_v9, %v339_v13  ;;  %v419_v27 = vld [vmem:[#allocation2 + $0x7c] sm:$0xff]  ;;  %v525_v31 = vmax.f32 %v493_v17, %v860_v4  ;;  %v420_v40 = vld [vmem:[#allocation2 + $0x84] sm:$0xff]  ;;  %v223_v45 = vmax.f32 %v143_v38, %v183_v39  ;;  %v144_v46 = vld [vmem:[#allocation2 + $0xb0] sm:$0xff]  ;;  %v381_v54 = vmax.f32 %v301_v41, %v341_v43 }
  0x38   :  { %v300_v24 = vmax.f32 %v220_v11, %v260_v14  ;;  %v553_v34 = vmax.f32 %v521_v20, %v455_v2  ;;  %v555_v23 = vmax.f32 %v523_v22, %v860_v4  ;;  %v262_v37 = vld [vmem:[#allocation2 + $0x9a] sm:$0xff]  ;;  %v263_v52 = vld [vmem:[#allocation2 + $0xaa] sm:$0xff]  ;;  %v264_v7 = vld [vmem:[#allocation2 + $0xb2] sm:$0xff] }
  0x39   :  { %v871_v35 = vmax.f32 %v379_v21, %v419_v27  ;;  %v302_v44 = vmax.f32 %v222_v32, %v262_v37  ;;  %v342_v51 = vld [vmem:[#allocation2 + $0x9b] sm:$0xff]  ;;  %v184_v53 = vld [vmem:[#allocation2 + $0xb1] sm:$0xff]  ;;  %v303_v56 = vmax.f32 %v223_v45, %v263_v52  ;;  %v146_v9 = vld [vmem:[#allocation2 + $0xc8] sm:$0xff] }
  0x3a   :  { %v380_v36 = vmax.f32 %v300_v24, %v340_v28  ;;  %v585_v47 = vmax.f32 %v553_v34, %v860_v4  ;;  %v145_v58 = vld [vmem:[#allocation2 + $0xc0] sm:$0xff]  ;;  %v421_v61 = vld [vmem:[#allocation2 + $0x94] sm:$0xff]  ;;  %v343_v0 = vld [vmem:[#allocation2 + $0xab] sm:$0xff]  ;;  %v224_v1 = vmax.f32 %v144_v46, %v184_v53 }
  0x3b   :  { %v587_v48 = vmax.f32 %v555_v23, %v871_v35  ;;  %v557_v50 = vmax.f32 %v525_v31, %v871_v35  ;;  %v382_v55 = vmax.f32 %v302_v44, %v342_v51  ;;  %v527_v57 = vmax.f32 %v495_v33, %v871_v35  ;;  %v185_v59 = vld [vmem:[#allocation2 + $0xc1] sm:$0xff]  ;;  %v186_v10 = vld [vmem:[#allocation2 + $0xc9] sm:$0xff]  ;;  %v147_v16 = vld [vmem:[#allocation2 + $0xd8] sm:$0xff] }
  0x3c   :  { %v876_v49 = vmax.f32 %v380_v36, %v420_v40  ;;  %617 = vst.msk [vmem:[%s1161_s1] sm:$0xff] %vm8_vm0, %v585_v47  ;;  %v422_v62 = vld [vmem:[#allocation2 + $0x9c] sm:$0xff]  ;;  %v892_v3 = vmax.f32 %v381_v54, %v421_v61  ;;  %v383_v6 = vmax.f32 %v303_v56, %v343_v0  ;;  %v225_v8 = vmax.f32 %v145_v58, %v185_v59  ;;  %v423_v11 = vld [vmem:[#allocation2 + $0xac] sm:$0xff]  ;;  %v424_v31 = vld [vmem:[#allocation2 + $0xb4] sm:$0xff] }
  0x3d   :  { %619 = vst.msk [vmem:[%s1161_s1 + $0x10] sm:$0xff] %vm8_vm0, %v587_v48  ;;  %v894_v5 = vmax.f32 %v382_v55, %v422_v62  ;;  %v304_v12 = vmax.f32 %v224_v1, %v264_v7  ;;  %v497_v13 = vmax.f32 %v860_v4, %v871_v35  ;;  %v226_v14 = vmax.f32 %v146_v9, %v186_v10  ;;  %v344_v21 = vld [vmem:[#allocation2 + $0xb3] sm:$0xff]  ;;  %v265_v22 = vld [vmem:[#allocation2 + $0xc2] sm:$0xff]  ;;  %v266_v28 = vld [vmem:[#allocation2 + $0xca] sm:$0xff] }
  0x3e   :  { %v588_v60 = vmax.f32 %v556_v15, %v876_v49  ;;  %v558_v63 = vmax.f32 %v865_v18, %v876_v49  ;;  %v528_v2 = vmax.f32 %v496_v19, %v876_v49  ;;  %v498_v15 = vmax.f32 %v847_v42, %v876_v49  ;;  %v187_v24 = vld [vmem:[#allocation2 + $0xd9] sm:$0xff]  ;;  %v188_v29 = vld [vmem:[#allocation2 + $0xe1] sm:$0xff]  ;;  %v346_v39 = vld [vmem:[#allocation2 + $0xcb] sm:$0xff] }
  0x3f   :  { %v589_v17 = vmax.f32 %v557_v50, %v892_v3  ;;  %v906_v19 = vmax.f32 %v383_v6, %v423_v11  ;;  %v559_v20 = vmax.f32 %v527_v57, %v892_v3  ;;  %v384_v25 = vmax.f32 %v304_v12, %v344_v21  ;;  %v148_v42 = vld [vmem:[#allocation2 + $0xe0] sm:$0xff]  ;;  %v149_v48 = vld [vmem:[#allocation2 + $0xf0] sm:$0xff]  ;;  %v150_v61 = vld [vmem:[#allocation2 + $0xf8] sm:$0xff] }
  0x40   :  { %620 = vst.msk [vmem:[%s1161_s1 + $0x18] sm:$0xff] %vm8_vm0, %v588_v60  ;;  %v590_v18 = vmax.f32 %v558_v63, %v894_v5  ;;  %v560_v26 = vmax.f32 %v528_v2, %v894_v5  ;;  %v305_v4 = vmax.f32 %v225_v8, %v265_v22  ;;  %v529_v27 = vmax.f32 %v497_v13, %v892_v3  ;;  %v345_v32 = vld [vmem:[#allocation2 + $0xc3] sm:$0xff]  ;;  %v267_v40 = vld [vmem:[#allocation2 + $0xda] sm:$0xff]  ;;  %v189_v50 = vld [vmem:[#allocation2 + $0xf1] sm:$0xff] }
  0x41   :  { %621 = vst.msk [vmem:[%s1161_s1 + $0x20] sm:$0xff] %vm8_vm0, %v589_v17  ;;  %v591_v30 = vmax.f32 %v559_v20, %v906_v19  ;;  %v306_v33 = vmax.f32 %v226_v14, %v266_v28  ;;  %v530_v34 = vmax.f32 %v498_v15, %v894_v5  ;;  %v227_v23 = vmax.f32 %v147_v16, %v187_v24  ;;  %v425_v43 = vld [vmem:[#allocation2 + $0xc4] sm:$0xff]  ;;  %v426_v53 = vld [vmem:[#allocation2 + $0xcc] sm:$0xff]  ;;  %v347_v54 = vld [vmem:[#allocation2 + $0xdb] sm:$0xff] }
  0x42   :  { %622 = vst.msk [vmem:[%s1161_s1 + $0x28] sm:$0xff] %vm8_vm0, %v590_v18  ;;  %v921_v36 = vmax.f32 %v384_v25, %v424_v31  ;;  %v385_v37 = vmax.f32 %v305_v4, %v345_v32  ;;  %v561_v38 = vmax.f32 %v529_v27, %v906_v19  ;;  %v499_v41 = vmax.f32 %v871_v35, %v892_v3  ;;  %v268_v56 = vld [vmem:[#allocation2 + $0xe2] sm:$0xff]  ;;  %v190_v62 = vld [vmem:[#allocation2 + $0xf9] sm:$0xff]  ;;  %v152_v18 = vld [vmem:[#allocation2 + $0x110] sm:$0xff] }
  0x43   :  { %623 = vst.msk [vmem:[%s1161_s1 + $0x30] sm:$0xff] %vm8_vm0, %v591_v30  ;;  %v386_v44 = vmax.f32 %v306_v33, %v346_v39  ;;  %v307_v45 = vmax.f32 %v227_v23, %v267_v40  ;;  %v228_v46 = vmax.f32 %v148_v42, %v188_v29  ;;  %v500_v47 = vmax.f32 %v876_v49, %v894_v5  ;;  %v427_v59 = vld [vmem:[#allocation2 + $0xdc] sm:$0xff]  ;;  %v151_v7 = vld [vmem:[#allocation2 + $0x108] sm:$0xff]  ;;  %v269_v13 = vld [vmem:[#allocation2 + $0xf2] sm:$0xff] }
  0x44   :  { %v592_v51 = vmax.f32 %v560_v26, %v921_v36  ;;  %v933_v52 = vmax.f32 %v385_v37, %v425_v43  ;;  %v562_v35 = vmax.f32 %v530_v34, %v921_v36  ;;  %v531_v55 = vmax.f32 %v499_v41, %v906_v19  ;;  %v348_v1 = vld [vmem:[#allocation2 + $0xe3] sm:$0xff]  ;;  %v192_v20 = vld [vmem:[#allocation2 + $0x111] sm:$0xff]  ;;  %v270_v25 = vld [vmem:[#allocation2 + $0xfa] sm:$0xff] }
  0x45   :  { %v937_v57 = vmax.f32 %v386_v44, %v426_v53  ;;  %v387_v58 = vmax.f32 %v307_v45, %v347_v54  ;;  %v308_v60 = vmax.f32 %v228_v46, %v268_v56  ;;  %v532_v49 = vmax.f32 %v500_v47, %v921_v36  ;;  %v191_v8 = vld [vmem:[#allocation2 + $0x109] sm:$0xff]  ;;  %v349_v24 = vld [vmem:[#allocation2 + $0xf3] sm:$0xff]  ;;  %v153_v30 = vld [vmem:[#allocation2 + $0x120] sm:$0xff] }
  0x46   :  { %624 = vst.msk [vmem:[%s1161_s1 + $0x38] sm:$0xff] %vm8_vm0, %v592_v51  ;;  %v593_v63 = vmax.f32 %v561_v38, %v933_v52  ;;  %v563_v0 = vmax.f32 %v531_v55, %v933_v52  ;;  %v229_v2 = vmax.f32 %v149_v48, %v189_v50  ;;  %v501_v6 = vmax.f32 %v892_v3, %v906_v19  ;;  %v428_v14 = vld [vmem:[#allocation2 + $0xe4] sm:$0xff]  ;;  %v429_v33 = vld [vmem:[#allocation2 + $0xf4] sm:$0xff]  ;;  %v430_v45 = vld [vmem:[#allocation2 + $0xfc] sm:$0xff] }
  0x47   :  { %v594_v9 = vmax.f32 %v562_v35, %v937_v57  ;;  %v949_v10 = vmax.f32 %v387_v58, %v427_v59  ;;  %v388_v11 = vmax.f32 %v308_v60, %v348_v1  ;;  %v564_v12 = vmax.f32 %v532_v49, %v937_v57  ;;  %v271_v29 = vld [vmem:[#allocation2 + $0x10a] sm:$0xff]  ;;  %v193_v31 = vld [vmem:[#allocation2 + $0x121] sm:$0xff]  ;;  %v272_v43 = vld [vmem:[#allocation2 + $0x112] sm:$0xff] }
  0x48   :  { %625 = vst.msk [vmem:[%s1161_s1 + $0x40] sm:$0xff] %vm8_vm0, %v593_v63  ;;  %v309_v15 = vmax.f32 %v229_v2, %v269_v13  ;;  %v533_v16 = vmax.f32 %v501_v6, %v933_v52  ;;  %v230_v3 = vmax.f32 %v150_v61, %v190_v62  ;;  %v502_v17 = vmax.f32 %v894_v5, %v921_v36  ;;  %v350_v34 = vld [vmem:[#allocation2 + $0xfb] sm:$0xff]  ;;  %v351_v41 = vld [vmem:[#allocation2 + $0x10b] sm:$0xff]  ;;  %v352_v56 = vld [vmem:[#allocation2 + $0x113] sm:$0xff] }
  0x49   :  { %626 = vst.msk [vmem:[%s1161_s1 + $0x48] sm:$0xff] %vm8_vm0, %v594_v9  ;;  %v595_v21 = vmax.f32 %v563_v0, %v949_v10  ;;  %v964_v22 = vmax.f32 %v388_v11, %v428_v14  ;;  %v231_v26 = vmax.f32 %v151_v7, %v191_v8  ;;  %v503_v4 = vmax.f32 %v906_v19, %v933_v52  ;;  %v154_v51 = vld [vmem:[#allocation2 + $0x128] sm:$0xff]  ;;  %v432_v61 = vld [vmem:[#allocation2 + $0x114] sm:$0xff]  ;;  %v156_v9 = vld [vmem:[#allocation2 + $0x140] sm:$0xff] }
  0x4a   :  { %v389_v27 = vmax.f32 %v309_v15, %v349_v24  ;;  %v565_v5 = vmax.f32 %v533_v16, %v949_v10  ;;  %v310_v28 = vmax.f32 %v230_v3, %v270_v25  ;;  %v534_v42 = vmax.f32 %v502_v17, %v937_v57  ;;  %v194_v53 = vld [vmem:[#allocation2 + $0x129] sm:$0xff]  ;;  %v155_v63 = vld [vmem:[#allocation2 + $0x138] sm:$0xff]  ;;  %v196_v11 = vld [vmem:[#allocation2 + $0x141] sm:$0xff] }
  0x4b   :  { %627 = vst.msk [vmem:[%s1161_s1 + $0x50] sm:$0xff] %vm8_vm0, %v595_v21  ;;  %v596_v32 = vmax.f32 %v564_v12, %v964_v22  ;;  %v311_v23 = vmax.f32 %v231_v26, %v271_v29  ;;  %v535_v19 = vmax.f32 %v503_v4, %v949_v10  ;;  %v232_v37 = vmax.f32 %v152_v18, %v192_v20  ;;  %v431_v55 = vld [vmem:[#allocation2 + $0x10c] sm:$0xff]  ;;  %v273_v59 = vld [vmem:[#allocation2 + $0x122] sm:$0xff]  ;;  %v195_v0 = vld [vmem:[#allocation2 + $0x139] sm:$0xff] }
  0x4c   :  { %v976_v38 = vmax.f32 %v389_v27, %v429_v33  ;;  %v390_v39 = vmax.f32 %v310_v28, %v350_v34  ;;  %v566_v40 = vmax.f32 %v534_v42, %v964_v22  ;;  %v504_v44 = vmax.f32 %v921_v36, %v937_v57  ;;  %v353_v6 = vld [vmem:[#allocation2 + $0x123] sm:$0xff]  ;;  %v157_v21 = vld [vmem:[#allocation2 + $0x150] sm:$0xff]  ;;  %v275_v27 = vld [vmem:[#allocation2 + $0x13a] sm:$0xff] }
  0x4d   :  { %628 = vst.msk [vmem:[%s1161_s1 + $0x58] sm:$0xff] %vm8_vm0, %v596_v32  ;;  %v391_v46 = vmax.f32 %v311_v23, %v351_v41  ;;  %v312_v47 = vmax.f32 %v232_v37, %v272_v43  ;;  %v233_v48 = vmax.f32 %v153_v30, %v193_v31  ;;  %v505_v50 = vmax.f32 %v933_v52, %v949_v10  ;;  %v274_v16 = vld [vmem:[#allocation2 + $0x12a] sm:$0xff]  ;;  %v276_v31 = vld [vmem:[#allocation2 + $0x142] sm:$0xff]  ;;  %v158_v32 = vld [vmem:[#allocation2 + $0x158] sm:$0xff] }
  0x4e   :  { %v597_v35 = vmax.f32 %v565_v5, %v976_v38  ;;  %v988_v54 = vmax.f32 %v390_v39, %v430_v45  ;;  %v567_v36 = vmax.f32 %v535_v19, %v976_v38  ;;  %v536_v58 = vmax.f32 %v504_v44, %v964_v22  ;;  %v433_v3 = vld [vmem:[#allocation2 + $0x124] sm:$0xff]  ;;  %v197_v24 = vld [vmem:[#allocation2 + $0x151] sm:$0xff]  ;;  %v198_v33 = vld [vmem:[#allocation2 + $0x159] sm:$0xff] }
  0x4f   :  { %v992_v60 = vmax.f32 %v391_v46, %v431_v55  ;;  %v392_v49 = vmax.f32 %v312_v47, %v352_v56  ;;  %v313_v62 = vmax.f32 %v233_v48, %v273_v59  ;;  %v537_v52 = vmax.f32 %v505_v50, %v976_v38  ;;  %v354_v4 = vld [vmem:[#allocation2 + $0x12b] sm:$0xff]  ;;  %v355_v19 = vld [vmem:[#allocation2 + $0x13b] sm:$0xff]  ;;  %v356_v44 = vld [vmem:[#allocation2 + $0x143] sm:$0xff] }
  0x50   :  { %629 = vst.msk [vmem:[%s1161_s1 + $0x60] sm:$0xff] %vm8_vm0, %v597_v35  ;;  %v598_v1 = vmax.f32 %v566_v40, %v988_v54  ;;  %v568_v2 = vmax.f32 %v536_v58, %v988_v54  ;;  %v234_v7 = vmax.f32 %v154_v51, %v194_v53  ;;  %v506_v8 = vmax.f32 %v937_v57, %v964_v22  ;;  %v434_v23 = vld [vmem:[#allocation2 + $0x12c] sm:$0xff]  ;;  %v435_v47 = vld [vmem:[#allocation2 + $0x13c] sm:$0xff]  ;;  %v436_v58 = vld [vmem:[#allocation2 + $0x144] sm:$0xff] }
  0x51   :  { %v599_v12 = vmax.f32 %v567_v36, %v992_v60  ;;  %v1004_v13 = vmax.f32 %v392_v49, %v432_v61  ;;  %v393_v14 = vmax.f32 %v313_v62, %v353_v6  ;;  %v569_v15 = vmax.f32 %v537_v52, %v992_v60  ;;  %v277_v45 = vld [vmem:[#allocation2 + $0x152] sm:$0xff]  ;;  %v159_v35 = vld [vmem:[#allocation2 + $0x168] sm:$0xff]  ;;  %v278_v61 = vld [vmem:[#allocation2 + $0x15a] sm:$0xff] }
  0x52   :  { %630 = vst.msk [vmem:[%s1161_s1 + $0x68] sm:$0xff] %vm8_vm0, %v598_v1  ;;  %v314_v17 = vmax.f32 %v234_v7, %v274_v16  ;;  %v538_v18 = vmax.f32 %v506_v8, %v988_v54  ;;  %v235_v57 = vmax.f32 %v155_v63, %v195_v0  ;;  %v507_v20 = vmax.f32 %v949_v10, %v976_v38  ;;  %v199_v55 = vld [vmem:[#allocation2 + $0x169] sm:$0xff]  ;;  %v357_v59 = vld [vmem:[#allocation2 + $0x153] sm:$0xff]  ;;  %v358_v8 = vld [vmem:[#allocation2 + $0x15b] sm:$0xff] }
  0x53   :  { %631 = vst.msk [vmem:[%s1161_s1 + $0x70] sm:$0xff] %vm8_vm0, %v599_v12  ;;  %v600_v25 = vmax.f32 %v568_v2, %v1004_v13  ;;  %v1019_v26 = vmax.f32 %v393_v14, %v433_v3  ;;  %v236_v5 = vmax.f32 %v156_v9, %v196_v11  ;;  %v508_v28 = vmax.f32 %v964_v22, %v988_v54  ;;  %v437_v63 = vld [vmem:[#allocation2 + $0x154] sm:$0xff]  ;;  %v161_v12 = vld [vmem:[#allocation2 + $0x180] sm:$0xff] }
  0x54   :  { %v394_v42 = vmax.f32 %v314_v17, %v354_v4  ;;  %v570_v10 = vmax.f32 %v538_v18, %v1004_v13  ;;  %v315_v29 = vmax.f32 %v235_v57, %v275_v27  ;;  %v539_v30 = vmax.f32 %v507_v20, %v992_v60  ;;  %v160_v1 = vld [vmem:[#allocation2 + $0x170] sm:$0xff]  ;;  %v201_v14 = vld [vmem:[#allocation2 + $0x181] sm:$0xff] }
  0x55   :  { %632 = vst.msk [vmem:[%s1161_s1 + $0x78] sm:$0xff] %vm8_vm0, %v600_v25  ;;  %v601_v34 = vmax.f32 %v569_v15, %v1019_v26  ;;  %v316_v37 = vmax.f32 %v236_v5, %v276_v31  ;;  %v540_v22 = vmax.f32 %v508_v28, %v1004_v13  ;;  %v237_v39 = vmax.f32 %v157_v21, %v197_v24  ;;  %v200_v2 = vld [vmem:[#allocation2 + $0x171] sm:$0xff]  ;;  %v438_v57 = vld [vmem:[#allocation2 + $0x15c] sm:$0xff]  ;;  %v162_v25 = vld [vmem:[#allocation2 + $0x188] sm:$0xff] }
  0x56   :  { %v1031_v40 = vmax.f32 %v394_v42, %v434_v23  ;;  %v395_v41 = vmax.f32 %v315_v29, %v355_v19  ;;  %v571_v43 = vmax.f32 %v539_v30, %v1019_v26  ;;  %v509_v46 = vmax.f32 %v976_v38, %v992_v60  ;;  %v279_v18 = vld [vmem:[#allocation2 + $0x16a] sm:$0xff]  ;;  %v280_v42 = vld [vmem:[#allocation2 + $0x172] sm:$0xff] }
  0x57   :  { %633 = vst.msk [vmem:[%s1161_s1 + $0x80] sm:$0xff] %vm8_vm0, %v601_v34  ;;  %v396_v48 = vmax.f32 %v316_v37, %v356_v44  ;;  %v317_v50 = vmax.f32 %v237_v39, %v277_v45  ;;  %v238_v51 = vmax.f32 %v158_v32, %v198_v33  ;;  %v510_v53 = vmax.f32 %v988_v54, %v1004_v13  ;;  %v202_v4 = vld [vmem:[#allocation2 + $0x189] sm:$0xff]  ;;  %v163_v34 = vld [vmem:[#allocation2 + $0x198] sm:$0xff] }
  0x58   :  { %v602_v36 = vmax.f32 %v570_v10, %v1031_v40  ;;  %v1043_v56 = vmax.f32 %v395_v41, %v435_v47  ;;  %v572_v38 = vmax.f32 %v540_v22, %v1031_v40  ;;  %v541_v49 = vmax.f32 %v509_v46, %v1019_v26  ;;  %v359_v28 = vld [vmem:[#allocation2 + $0x16b] sm:$0xff]  ;;  %v281_v33 = vld [vmem:[#allocation2 + $0x182] sm:$0xff]  ;;  %v203_v23 = vld [vmem:[#allocation2 + $0x199] sm:$0xff] }
  0x59   :  { %v1047_v62 = vmax.f32 %v396_v48, %v436_v58  ;;  %v397_v52 = vmax.f32 %v317_v50, %v357_v59  ;;  %v318_v0 = vmax.f32 %v238_v51, %v278_v61  ;;  %v542_v54 = vmax.f32 %v510_v53, %v1031_v40  ;;  %v439_v37 = vld [vmem:[#allocation2 + $0x16c] sm:$0xff]  ;;  %v361_v46 = vld [vmem:[#allocation2 + $0x183] sm:$0xff]  ;;  %v283_v50 = vld [vmem:[#allocation2 + $0x19a] sm:$0xff] }
  0x5a   :  { %634 = vst.msk [vmem:[%s1161_s1 + $0x88] sm:$0xff] %vm8_vm0, %v602_v36  ;;  %v603_v6 = vmax.f32 %v571_v43, %v1043_v56  ;;  %v573_v7 = vmax.f32 %v541_v49, %v1043_v56  ;;  %v239_v9 = vmax.f32 %v159_v35, %v199_v55  ;;  %v511_v11 = vmax.f32 %v992_v60, %v1019_v26  ;;  %v360_v22 = vld [vmem:[#allocation2 + $0x173] sm:$0xff]  ;;  %v282_v47 = vld [vmem:[#allocation2 + $0x18a] sm:$0xff]  ;;  %v164_v58 = vld [vmem:[#allocation2 + $0x1a0] sm:$0xff] }
  0x5b   :  { %v604_v15 = vmax.f32 %v572_v38, %v1047_v62  ;;  %v1059_v16 = vmax.f32 %v397_v52, %v437_v63  ;;  %v398_v3 = vmax.f32 %v318_v0, %v358_v8  ;;  %v574_v17 = vmax.f32 %v542_v54, %v1047_v62  ;;  %v440_v51 = vld [vmem:[#allocation2 + $0x174] sm:$0xff]  ;;  %v204_v38 = vld [vmem:[#allocation2 + $0x1a1] sm:$0xff]  ;;  %v362_v52 = vld [vmem:[#allocation2 + $0x18b] sm:$0xff] }
  0x5c   :  { %635 = vst.msk [vmem:[%s1161_s1 + $0x90] sm:$0xff] %vm8_vm0, %v603_v6  ;;  %v319_v20 = vmax.f32 %v239_v9, %v279_v18  ;;  %v543_v21 = vmax.f32 %v511_v11, %v1043_v56  ;;  %v240_v60 = vmax.f32 %v160_v1, %v200_v2  ;;  %v512_v24 = vmax.f32 %v1004_v13, %v1031_v40  ;;  %v442_v63 = vld [vmem:[#allocation2 + $0x18c] sm:$0xff] }
  0x5d   :  { %636 = vst.msk [vmem:[%s1161_s1 + $0x98] sm:$0xff] %vm8_vm0, %v604_v15  ;;  %v605_v27 = vmax.f32 %v573_v7, %v1059_v16  ;;  %v1074_v5 = vmax.f32 %v398_v3, %v438_v57  ;;  %v241_v10 = vmax.f32 %v161_v12, %v201_v14  ;;  %v513_v29 = vmax.f32 %v1019_v26, %v1043_v56  ;;  %v165_v7 = vld [vmem:[#allocation2 + $0x1b0] sm:$0xff]  ;;  %v363_v12 = vld [vmem:[#allocation2 + $0x19b] sm:$0xff] }
  0x5e   :  { %v399_v30 = vmax.f32 %v319_v20, %v359_v28  ;;  %v575_v13 = vmax.f32 %v543_v21, %v1059_v16  ;;  %v320_v31 = vmax.f32 %v240_v60, %v280_v42  ;;  %v544_v32 = vmax.f32 %v512_v24, %v1047_v62  ;;  %v205_v8 = vld [vmem:[#allocation2 + $0x1b1] sm:$0xff]  ;;  %v443_v21 = vld [vmem:[#allocation2 + $0x19c] sm:$0xff]  ;;  %v167_v42 = vld [vmem:[#allocation2 + $0x1c8] sm:$0xff] }
  0x5f   :  { %637 = vst.msk [vmem:[%s1161_s1 + $0xa0] sm:$0xff] %vm8_vm0, %v605_v27  ;;  %v606_v19 = vmax.f32 %v574_v17, %v1074_v5  ;;  %v321_v39 = vmax.f32 %v241_v10, %v281_v33  ;;  %v545_v26 = vmax.f32 %v513_v29, %v1059_v16  ;;  %v242_v41 = vmax.f32 %v162_v25, %v202_v4  ;;  %v166_v3 = vld [vmem:[#allocation2 + $0x1b8] sm:$0xff]  ;;  %v207_v10 = vld [vmem:[#allocation2 + $0x1c9] sm:$0xff] }
  0x60   :  { %v1086_v43 = vmax.f32 %v399_v30, %v439_v37  ;;  %v400_v44 = vmax.f32 %v320_v31, %v360_v22  ;;  %v576_v45 = vmax.f32 %v544_v32, %v1074_v5  ;;  %v514_v48 = vmax.f32 %v1031_v40, %v1047_v62  ;;  %v441_v40 = vld [vmem:[#allocation2 + $0x184] sm:$0xff]  ;;  %v206_v17 = vld [vmem:[#allocation2 + $0x1b9] sm:$0xff] }
  0x61   :  { %638 = vst.msk [vmem:[%s1161_s1 + $0xa8] sm:$0xff] %vm8_vm0, %v606_v19  ;;  %v401_v53 = vmax.f32 %v321_v39, %v361_v46  ;;  %v322_v35 = vmax.f32 %v242_v41, %v282_v47  ;;  %v243_v55 = vmax.f32 %v163_v34, %v203_v23  ;;  %v515_v36 = vmax.f32 %v1043_v56, %v1059_v16  ;;  %v284_v56 = vld [vmem:[#allocation2 + $0x1a2] sm:$0xff]  ;;  %v285_v24 = vld [vmem:[#allocation2 + $0x1b2] sm:$0xff]  ;;  %v286_v28 = vld [vmem:[#allocation2 + $0x1ba] sm:$0xff] }
  0x62   :  { %v607_v59 = vmax.f32 %v575_v13, %v1086_v43  ;;  %v1098_v49 = vmax.f32 %v400_v44, %v440_v51  ;;  %v577_v61 = vmax.f32 %v545_v26, %v1086_v43  ;;  %v546_v0 = vmax.f32 %v514_v48, %v1074_v5  ;;  %v364_v13 = vld [vmem:[#allocation2 + $0x1a3] sm:$0xff]  ;;  %v365_v31 = vld [vmem:[#allocation2 + $0x1b3] sm:$0xff]  ;;  %v366_v33 = vld [vmem:[#allocation2 + $0x1bb] sm:$0xff] }
  0x63   :  { %v1102_v54 = vmax.f32 %v401_v53, %v441_v40  ;;  %v402_v1 = vmax.f32 %v322_v35, %v362_v52  ;;  %v323_v2 = vmax.f32 %v243_v55, %v283_v50  ;;  %v547_v6 = vmax.f32 %v515_v36, %v1086_v43  ;;  %v287_v22 = vld [vmem:[#allocation2 + $0x1ca] sm:$0xff]  ;;  %v446_v51 = vld [vmem:[#allocation2 + $0x1bc] sm:$0xff]  ;;  %v288_v55 = vld [vmem:[#allocation2 + $0x1d2] sm:$0xff] }
  0x64   :  { %639 = vst.msk [vmem:[%s1161_s1 + $0xb0] sm:$0xff] %vm8_vm0, %v607_v59  ;;  %v608_v9 = vmax.f32 %v576_v45, %v1098_v49  ;;  %v578_v11 = vmax.f32 %v546_v0, %v1098_v49  ;;  %v244_v14 = vmax.f32 %v164_v58, %v204_v38  ;;  %v516_v15 = vmax.f32 %v1047_v62, %v1074_v5  ;;  %v168_v39 = vld [vmem:[#allocation2 + $0x1d0] sm:$0xff]  ;;  %v444_v44 = vld [vmem:[#allocation2 + $0x1a4] sm:$0xff] }
  0x65   :  { %v609_v18 = vmax.f32 %v577_v61, %v1102_v54  ;;  %v482_v57 = vmax.f32 %v402_v1, %v442_v63  ;;  %v403_v20 = vmax.f32 %v323_v2, %v363_v12  ;;  %v579_v60 = vmax.f32 %v547_v6, %v1102_v54  ;;  %v208_v26 = vld [vmem:[#allocation2 + $0x1d1] sm:$0xff] }
  0x66   :  { %640 = vst.msk [vmem:[%s1161_s1 + $0xb8] sm:$0xff] %vm8_vm0, %v608_v9  ;;  %v324_v25 = vmax.f32 %v244_v14, %v284_v56  ;;  %v548_v4 = vmax.f32 %v516_v15, %v1098_v49  ;;  %v245_v27 = vmax.f32 %v165_v7, %v205_v8  ;;  %v517_v62 = vmax.f32 %v1059_v16, %v1086_v43  ;;  %v367_v53 = vld [vmem:[#allocation2 + $0x1cb] sm:$0xff]  ;;  %v445_v36 = vld [vmem:[#allocation2 + $0x1b4] sm:$0xff] }
  0x67   :  { %641 = vst.msk [vmem:[%s1161_s1 + $0xc0] sm:$0xff] %vm8_vm0, %v609_v18  ;;  %v610_v29 = vmax.f32 %v578_v11, %v482_v57  ;;  %v483_v30 = vmax.f32 %v403_v20, %v443_v21  ;;  %v246_v32 = vmax.f32 %v166_v3, %v206_v17  ;;  %v518_v34 = vmax.f32 %v1074_v5, %v1098_v49  ;;  %v447_v0 = vld [vmem:[#allocation2 + $0x1cc] sm:$0xff]  ;;  %v448_v9 = vld [vmem:[#allocation2 + $0x1d4] sm:$0xff] }
  0x68   :  { %v404_v23 = vmax.f32 %v324_v25, %v364_v13  ;;  %v580_v19 = vmax.f32 %v548_v4, %v482_v57  ;;  %v325_v16 = vmax.f32 %v245_v27, %v285_v24  ;;  %v549_v37 = vmax.f32 %v517_v62, %v1102_v54  ;;  %v368_v2 = vld [vmem:[#allocation2 + $0x1d3] sm:$0xff] }
  0x69   :  { %642 = vst.msk [vmem:[%s1161_s1 + $0xc8] sm:$0xff] %vm8_vm0, %v610_v29  ;;  %v611_v41 = vmax.f32 %v579_v60, %v483_v30  ;;  %v326_v45 = vmax.f32 %v246_v32, %v286_v28  ;;  %v550_v46 = vmax.f32 %v518_v34, %v482_v57  ;;  %v247_v47 = vmax.f32 %v167_v42, %v207_v10 }
  0x6a   :  { %v484_v48 = vmax.f32 %v404_v23, %v444_v44  ;;  %v405_v5 = vmax.f32 %v325_v16, %v365_v31  ;;  %v581_v50 = vmax.f32 %v549_v37, %v483_v30  ;;  %v519_v35 = vmax.f32 %v1086_v43, %v1102_v54 }
  0x6b   :  { %643 = vst.msk [vmem:[%s1161_s1 + $0xd0] sm:$0xff] %vm8_vm0, %v611_v41  ;;  %v406_v58 = vmax.f32 %v326_v45, %v366_v33  ;;  %v327_v38 = vmax.f32 %v247_v47, %v287_v22  ;;  %v248_v59 = vmax.f32 %v168_v39, %v208_v26  ;;  %v520_v40 = vmax.f32 %v1098_v49, %v482_v57 }
  0x6c   :  { %v612_v61 = vmax.f32 %v580_v19, %v484_v48  ;;  %v485_v52 = vmax.f32 %v405_v5, %v445_v36  ;;  %v582_v63 = vmax.f32 %v550_v46, %v484_v48  ;;  %v551_v1 = vmax.f32 %v519_v35, %v483_v30 }
  0x6d   :  { %v486_v6 = vmax.f32 %v406_v58, %v446_v51  ;;  %v407_v43 = vmax.f32 %v327_v38, %v367_v53  ;;  %v328_v54 = vmax.f32 %v248_v59, %v288_v55  ;;  %v552_v56 = vmax.f32 %v520_v40, %v484_v48 }
  0x6e   :  { %644 = vst.msk [vmem:[%s1161_s1 + $0xd8] sm:$0xff] %vm8_vm0, %v612_v61  ;;  %v613_v7 = vmax.f32 %v581_v50, %v485_v52  ;;  %v583_v8 = vmax.f32 %v551_v1, %v485_v52 }
  0x6f   :  { %v614_v11 = vmax.f32 %v582_v63, %v486_v6  ;;  %v487_v49 = vmax.f32 %v407_v43, %v447_v0  ;;  %v408_v12 = vmax.f32 %v328_v54, %v368_v2  ;;  %v584_v14 = vmax.f32 %v552_v56, %v486_v6 }
  0x70   :  { %645 = vst.msk [vmem:[%s1161_s1 + $0xe0] sm:$0xff] %vm8_vm0, %v613_v7 }
  0x71   :  { %646 = vst.msk [vmem:[%s1161_s1 + $0xe8] sm:$0xff] %vm8_vm0, %v614_v11  ;;  %v615_v15 = vmax.f32 %v583_v8, %v487_v49  ;;  %v488_v3 = vmax.f32 %v408_v12, %v448_v9 }
  0x73   :  { %647 = vst.msk [vmem:[%s1161_s1 + $0xf0] sm:$0xff] %vm8_vm0, %v615_v15  ;;  %v616_v17 = vmax.f32 %v584_v14, %v488_v3 }
  0x75   :  { %648 = vst.msk [vmem:[%s1161_s1 + $0xf8] sm:$0xff] %vm8_vm0, %v616_v17 }

</bundles_post_ra>
